<compile_context>
chip_gen: v6e
topology: v6e:2x2x1
jax: 0.10.0
libtpu: 0.0.40
codegen_flags: <defaults>
</compile_context>

<pallas_src>
import functools

import jax
import jax.numpy as jnp
from jax.experimental import pallas as pl
from jax.experimental.pallas import tpu as pltpu


def _topk_write(logits_f32, vals_ref, idx_ref, *, top_k):
    """Iterative top-k (k small & static) over the last dim; one store per output."""
    n_exp = logits_f32.shape[-1]
    col = jax.lax.broadcasted_iota(jnp.int32, logits_f32.shape, 1)
    work = logits_f32
    vals, idxs = [], []
    for _ in range(top_k):
        m = jnp.max(work, axis=-1, keepdims=True)
        # first-occurrence argmax (matches torch / lax.top_k tie-breaking)
        i = jnp.min(jnp.where(work == m, col, n_exp), axis=-1, keepdims=True)
        vals.append(m)
        idxs.append(i)
        work = jnp.where(col == i, -jnp.inf, work)
    vals_ref[...] = jnp.concatenate(vals, axis=-1).astype(vals_ref.dtype)
    idx_ref[...] = jnp.concatenate(idxs, axis=-1)


def _router_kernel_noisy(x_ref, wg_ref, wn_ref, gauss_ref, vals_ref, idx_ref,
                         *, top_k):
    # x_ref: (tn, d), wg_ref/wn_ref: (d, n_exp), gauss_ref: (tn, n_exp)
    x = x_ref[...]
    logits = jnp.dot(x, wg_ref[...], preferred_element_type=jnp.float32)
    noise_pre = jnp.dot(x, wn_ref[...], preferred_element_type=jnp.float32)
    logits = logits + jax.nn.softplus(noise_pre) * gauss_ref[...].astype(jnp.float32)
    _topk_write(logits, vals_ref, idx_ref, top_k=top_k)


def _router_kernel_plain(x_ref, wg_ref, vals_ref, idx_ref, *, top_k):
    logits = jnp.dot(x_ref[...], wg_ref[...], preferred_element_type=jnp.float32)
    _topk_write(logits, vals_ref, idx_ref, top_k=top_k)


def basic_softmax_router(x, w_g, w_noise=None, gauss=None, *, top_k=2):
    """x: (..., d); w_g / w_noise: (d, n_exp)  [pre-transposed vs torch Linear.weight].
    Returns (top_k_logits, top_k_indices), each shaped (..., top_k)."""
    *lead, d = x.shape
    n_exp = w_g.shape[-1]
    assert w_g.shape == (d, n_exp)
    use_noise = w_noise is not None
    if use_noise:
        assert w_noise.shape == (d, n_exp)
        assert gauss is not None and gauss.shape[-1] == n_exp

    x2 = x.reshape(-1, d)
    N = x2.shape[0]

    # Token tiling: one grid step for small N; 256-row tiles otherwise.
    tn = 256 if (N % 256 == 0 and N > 256) else N
    grid = (N // tn,)

    vals_shape = jax.ShapeDtypeStruct((N, top_k), x.dtype)
    idx_shape = jax.ShapeDtypeStruct((N, top_k), jnp.int32)
    out_specs = (pl.BlockSpec((tn, top_k), lambda i: (i, 0)),
                 pl.BlockSpec((tn, top_k), lambda i: (i, 0)))

    itemsize = jnp.dtype(x.dtype).itemsize
    n_mats = 2 if use_noise else 1
    cost = pl.CostEstimate(
        flops=2 * N * d * n_exp * n_mats,
        transcendentals=(2 * N * n_exp) if use_noise else 0,   # softplus: exp + log1p
        bytes_accessed=(N * d + n_mats * d * n_exp
                        + (N * n_exp if use_noise else 0)
                        + N * top_k) * itemsize + N * top_k * 4,
    )
    cparams = pltpu.CompilerParams(dimension_semantics=("parallel",))

    if use_noise:
        gauss2 = gauss.reshape(N, n_exp)
        vals, idx = pl.pallas_call(
            functools.partial(_router_kernel_noisy, top_k=top_k),
            out_shape=(vals_shape, idx_shape),
            grid=grid,
            in_specs=[
                pl.BlockSpec((tn, d), lambda i: (i, 0)),       # x token tile
                pl.BlockSpec((d, n_exp), lambda i: (0, 0)),    # W_g   (VMEM-resident)
                pl.BlockSpec((d, n_exp), lambda i: (0, 0)),    # W_noise (VMEM-resident)
                pl.BlockSpec((tn, n_exp), lambda i: (i, 0)),   # gaussian tile
            ],
            out_specs=out_specs,
            compiler_params=cparams,
            cost_estimate=cost,
        )(x2, w_g, w_noise, gauss2)
    else:
        vals, idx = pl.pallas_call(
            functools.partial(_router_kernel_plain, top_k=top_k),
            out_shape=(vals_shape, idx_shape),
            grid=grid,
            in_specs=[
                pl.BlockSpec((tn, d), lambda i: (i, 0)),
                pl.BlockSpec((d, n_exp), lambda i: (0, 0)),
            ],
            out_specs=out_specs,
            compiler_params=cparams,
            cost_estimate=cost,
        )(x2, w_g)

    return vals.reshape(*lead, top_k), idx.reshape(*lead, top_k)


def basic_softmax_router_ref(x, w_g, w_noise=None, gauss=None, *, top_k=2):
    logits = jnp.einsum("...d,de->...e", x, w_g).astype(jnp.float32)
    if w_noise is not None:
        noise = jax.nn.softplus(
            jnp.einsum("...d,de->...e", x, w_noise).astype(jnp.float32))
        logits = logits + noise * gauss.astype(jnp.float32)
    vals, idx = jax.lax.top_k(logits, top_k)
    return vals.astype(x.dtype), idx.astype(jnp.int32)


if __name__ == "__main__":
    # Small shapes consistent with the module: batch=2, seq=8, d=32, n_exp=8, top_k=2.
    B, T, d, n_exp, top_k = 2, 8, 32, 8, 2

    key = jax.random.PRNGKey(0)
    kx, kg, kn, kz = jax.random.split(key, 4)

    x = jax.random.normal(kx, (B, T, d), dtype=jnp.float32)
    # torch nn.Linear(d, n_exp).weight is (n_exp, d); weights passed pre-transposed.
    w_g = 0.02 * jax.random.normal(kg, (d, n_exp), dtype=jnp.float32)
    w_noise = 0.02 * jax.random.normal(kn, (d, n_exp), dtype=jnp.float32)
    # torch.randn_like(noise) equivalent, sampled once in the wrapper.
    gauss = jax.random.normal(kz, (B, T, n_exp), dtype=jnp.float32)

    vals, idx = jax.block_until_ready(
        basic_softmax_router(x, w_g, w_noise, gauss, top_k=top_k))
    vref, iref = basic_softmax_router_ref(x, w_g, w_noise, gauss, top_k=top_k)

    assert vals.shape == (B, T, top_k) and idx.shape == (B, T, top_k)
    assert jnp.allclose(vals, vref, atol=1e-5, rtol=1e-5), \
        f"max abs err {jnp.max(jnp.abs(vals - vref))}"
    assert jnp.array_equal(idx, iref), "top-k indices mismatch"
    print("KERNEL_OK")
</pallas_src>

<mosaic_0001>
module attributes {stable_mosaic.version = 11 : i64} {
  func.func @_router_kernel_noisy(%arg0: i32, %arg1: memref<16x32xf32, #tpu.memory_space<vmem>>, %arg2: memref<32x8xf32, #tpu.memory_space<vmem>>, %arg3: memref<32x8xf32, #tpu.memory_space<vmem>>, %arg4: memref<16x8xf32, #tpu.memory_space<vmem>>, %arg5: memref<16x2xf32, #tpu.memory_space<vmem>>, %arg6: memref<16x2xi32, #tpu.memory_space<vmem>>) attributes {dimension_semantics = [#tpu.dimension_semantics<parallel>], iteration_bounds = array<i64: 1>, scalar_prefetch = 0 : i64, scratch_operands = 0 : i64, tpu.core_type = #tpu.core_type<tc>, window_params = [{transform_indices = @transform_0, window_bounds = array<i64: 16, 32>}, {pipeline_mode = #tpu.pipeline_mode<synchronous>, transform_indices = @transform_1, window_bounds = array<i64: 32, 8>}, {pipeline_mode = #tpu.pipeline_mode<synchronous>, transform_indices = @transform_2, window_bounds = array<i64: 32, 8>}, {transform_indices = @transform_3, window_bounds = array<i64: 16, 8>}, {transform_indices = @transform_4, window_bounds = array<i64: 16, 2>}, {transform_indices = @transform_5, window_bounds = array<i64: 16, 2>}]} {
    %c0 = arith.constant 0 : index
    %c0_0 = arith.constant 0 : index
    %0 = vector.load %arg1[%c0, %c0_0] : memref<16x32xf32, #tpu.memory_space<vmem>>, vector<16x32xf32>
    %c0_1 = arith.constant 0 : index
    %c0_2 = arith.constant 0 : index
    %1 = vector.load %arg2[%c0_1, %c0_2] : memref<32x8xf32, #tpu.memory_space<vmem>>, vector<32x8xf32>
    %cst = arith.constant dense<0.000000e+00> : vector<16x8xf32>
    %2 = tpu.matmul %0, %1, %cst {dimension_numbers = #tpu.dot_dimension_numbers<[1], [0], [0], [1], [0, 0, 1, 1], [], []>} : vector<16x32xf32>, vector<32x8xf32>, vector<16x8xf32> -> vector<16x8xf32>
    %c0_3 = arith.constant 0 : index
    %c0_4 = arith.constant 0 : index
    %3 = vector.load %arg3[%c0_3, %c0_4] : memref<32x8xf32, #tpu.memory_space<vmem>>, vector<32x8xf32>
    %cst_5 = arith.constant dense<0.000000e+00> : vector<16x8xf32>
    %4 = tpu.matmul %0, %3, %cst_5 {dimension_numbers = #tpu.dot_dimension_numbers<[1], [0], [0], [1], [0, 0, 1, 1], [], []>} : vector<16x32xf32>, vector<32x8xf32>, vector<16x8xf32> -> vector<16x8xf32>
    %cst_6 = arith.constant 0.000000e+00 : f32
    %5 = vector.broadcast %cst_6 : f32 to vector<16x8xf32>
    %6 = arith.maximumf %4, %5 : vector<16x8xf32>
    %7 = vector.broadcast %cst_6 : f32 to vector<16x8xf32>
    %8 = arith.subf %4, %7 : vector<16x8xf32>
    %9 = arith.cmpf one, %8, %8 : vector<16x8xf32>
    %10 = vector.broadcast %cst_6 : f32 to vector<16x8xf32>
    %11 = arith.addf %4, %10 : vector<16x8xf32>
    %12 = math.absf %8 : vector<16x8xf32>
    %cst_7 = arith.constant 0.000000e+00 : f32
    %13 = vector.broadcast %cst_7 : f32 to vector<16x8xf32>
    %14 = arith.subf %13, %12 : vector<16x8xf32>
    %15 = math.exp %14 : vector<16x8xf32>
    %16 = math.log1p %15 : vector<16x8xf32>
    %17 = arith.addf %6, %16 : vector<16x8xf32>
    %18 = arith.select %9, %11, %17 : vector<16x8xi1>, vector<16x8xf32>
    %c0_8 = arith.constant 0 : index
    %c0_9 = arith.constant 0 : index
    %19 = vector.load %arg4[%c0_8, %c0_9] : memref<16x8xf32, #tpu.memory_space<vmem>>, vector<16x8xf32>
    %20 = arith.mulf %18, %19 : vector<16x8xf32>
    %21 = arith.addf %2, %20 : vector<16x8xf32>
    %22 = tpu.iota {dimensions = array<i32: 1>} : vector<16x8xi32>
    %cst_10 = arith.constant dense<0xFF800000> : vector<16xf32>
    %23 = vector.multi_reduction <maximumf>, %21, %cst_10 [1] : vector<16x8xf32> to vector<16xf32>
    %24 = vector.shape_cast %23 : vector<16xf32> to vector<16x1xf32>
    %25 = vector.broadcast %24 : vector<16x1xf32> to vector<16x8xf32>
    %26 = arith.cmpf oeq, %21, %25 : vector<16x8xf32>
    %c8_i32 = arith.constant 8 : i32
    %27 = vector.broadcast %c8_i32 : i32 to vector<16x8xi32>
    %28 = arith.select %26, %22, %27 : vector<16x8xi1>, vector<16x8xi32>
    %cst_11 = arith.constant dense<2147483647> : vector<16xi32>
    %29 = vector.multi_reduction <minsi>, %28, %cst_11 [1] : vector<16x8xi32> to vector<16xi32>
    %30 = vector.shape_cast %29 : vector<16xi32> to vector<16x1xi32>
    %31 = vector.broadcast %30 : vector<16x1xi32> to vector<16x8xi32>
    %32 = arith.cmpi eq, %22, %31 : vector<16x8xi32>
    %cst_12 = arith.constant 0xFF800000 : f32
    %33 = vector.broadcast %cst_12 : f32 to vector<16x8xf32>
    %34 = arith.select %32, %33, %21 : vector<16x8xi1>, vector<16x8xf32>
    %cst_13 = arith.constant dense<0xFF800000> : vector<16xf32>
    %35 = vector.multi_reduction <maximumf>, %34, %cst_13 [1] : vector<16x8xf32> to vector<16xf32>
    %36 = vector.shape_cast %35 : vector<16xf32> to vector<16x1xf32>
    %37 = vector.broadcast %36 : vector<16x1xf32> to vector<16x8xf32>
    %38 = arith.cmpf oeq, %34, %37 : vector<16x8xf32>
    %c8_i32_14 = arith.constant 8 : i32
    %39 = vector.broadcast %c8_i32_14 : i32 to vector<16x8xi32>
    %40 = arith.select %38, %22, %39 : vector<16x8xi1>, vector<16x8xi32>
    %cst_15 = arith.constant dense<2147483647> : vector<16xi32>
    %41 = vector.multi_reduction <minsi>, %40, %cst_15 [1] : vector<16x8xi32> to vector<16xi32>
    %42 = vector.shape_cast %41 : vector<16xi32> to vector<16x1xi32>
    %43 = tpu.concatenate %24, %36 in 1 : vector<16x1xf32>, vector<16x1xf32> -> vector<16x2xf32>
    %c0_16 = arith.constant 0 : index
    %c0_17 = arith.constant 0 : index
    %44 = vector.load %arg5[%c0_16, %c0_17] : memref<16x2xf32, #tpu.memory_space<vmem>>, vector<16x2xf32>
    tpu.vector_store %arg5[%c0_16, %c0_17], %43 {strides = array<i32>} : memref<16x2xf32, #tpu.memory_space<vmem>>, vector<16x2xf32>,
    %45 = tpu.concatenate %30, %42 in 1 : vector<16x1xi32>, vector<16x1xi32> -> vector<16x2xi32>
    %c0_18 = arith.constant 0 : index
    %c0_19 = arith.constant 0 : index
    %46 = vector.load %arg6[%c0_18, %c0_19] : memref<16x2xi32, #tpu.memory_space<vmem>>, vector<16x2xi32>
    tpu.vector_store %arg6[%c0_18, %c0_19], %45 {strides = array<i32>} : memref<16x2xi32, #tpu.memory_space<vmem>>, vector<16x2xi32>,
    return
  }
  func.func @transform_0(%arg0: i32) -> (i32, i32) {
    %c0_i32 = arith.constant 0 : i32
    %c0_i32_0 = arith.constant 0 : i32
    return %arg0, %c0_i32 : i32, i32
  }
  func.func @transform_1(%arg0: i32) -> (i32, i32) {
    %c0_i32 = arith.constant 0 : i32
    %c0_i32_0 = arith.constant 0 : i32
    %c0_i32_1 = arith.constant 0 : i32
    return %c0_i32, %c0_i32_0 : i32, i32
  }
  func.func @transform_2(%arg0: i32) -> (i32, i32) {
    %c0_i32 = arith.constant 0 : i32
    %c0_i32_0 = arith.constant 0 : i32
    %c0_i32_1 = arith.constant 0 : i32
    return %c0_i32, %c0_i32_0 : i32, i32
  }
  func.func @transform_3(%arg0: i32) -> (i32, i32) {
    %c0_i32 = arith.constant 0 : i32
    %c0_i32_0 = arith.constant 0 : i32
    return %arg0, %c0_i32 : i32, i32
  }
  func.func @transform_4(%arg0: i32) -> (i32, i32) {
    %c0_i32 = arith.constant 0 : i32
    %c0_i32_0 = arith.constant 0 : i32
    return %arg0, %c0_i32 : i32, i32
  }
  func.func @transform_5(%arg0: i32) -> (i32, i32) {
    %c0_i32 = arith.constant 0 : i32
    %c0_i32_0 = arith.constant 0 : i32
    return %arg0, %c0_i32 : i32, i32
  }
}

</mosaic_0001>

<bundles_post_ra>
// kernel: tpu_custom_call.1
= control target key start
LH: loop header
LB: loop body
LE: loop exit
PB: predicated region body
PF: predicated region fallthrough
CT: control target
= control target key end

     0   :  { %vm29_vm0 = vcmask 261120   ;;  %vm228_vm5 = vcmask 64512   ;;  %v226_v52 = vlaneseq  ;;  %vm313_vm12 = vcmask 7168   ;;  %s475_s2 = inlined_call_operand.vmem [shape: f32[32,8], index: 2, kind: input, shape index: {}]   ;;  %s476_s0 = inlined_call_operand.vmem [shape: f32[16,32], index: 0, kind: input, shape index: {}]   ;;  %s477_s1 = inlined_call_operand.vmem [shape: f32[32,8], index: 1, kind: input, shape index: {}]   ;;  %s478_s3 = inlined_call_operand.vmem [shape: f32[16,8], index: 3, kind: input, shape index: {}]   ;;  %s479_s4 = inlined_call_operand.vmem [shape: f32[16,2], index: 4, kind: output, shape index: {0}]   ;;  %s480_s5 = inlined_call_operand.vmem [shape: s32[16,2], index: 5, kind: output, shape index: {1}]  }
   0x1   :  { %v28_v0 = vld [vmem:[%s475_s2 + $0x18] sm:$0xff]  ;;  %v27_v1 = vld [vmem:[%s475_s2 + $0x10] sm:$0xff]  ;;  %v19_v2 = vld [vmem:[%s476_s0] sm:$0xff]  ;;  %vm316_vm13 = vcmask 15360  }
   0x2   :  { %347 = vmatprep.subr.mxu0 %v28_v0  ;;  %v26_v3 = vld [vmem:[%s475_s2 + $0x8] sm:$0xff]  ;;  %355 = vmatprep.mubr.msk.f32.mxu0 %vm29_vm0, %v19_v2  ;;  %v24_v4 = vld [vmem:[%s477_s1 + $0x18] sm:$0xff]  ;;  %v23_v5 = vld [vmem:[%s477_s1 + $0x10] sm:$0xff]  ;;  %v227_v53 = vand.u32 127, %v226_v52 }
   0x3   :  { %348 = vmatpush3.msra.mxu0 %v28_v0  ;;  %358 = vmatprep.subr.mxu1 %v24_v4  ;;  %v25_v6 = vld [vmem:[%s475_s2] sm:$0xff]  ;;  %v22_v7 = vld [vmem:[%s477_s1 + $0x8] sm:$0xff] }
   0x4   :  { %349 = vmatprep.subr.mxu0 %v27_v1  ;;  %359 = vmatpush3.msra.mxu1 %v24_v4  ;;  %v20_v8 = vld [vmem:[%s476_s0 + $0x8] sm:$0xff]  ;;  %v21_v9 = vld [vmem:[%s477_s1] sm:$0xff] }
   0x5   :  { %350 = vmatpush3.msra.mxu0 %v27_v1  ;;  %360 = vmatprep.subr.mxu1 %v23_v5  ;;  %v148_v41 = vld [vmem:[%s478_s3 + $0x8] sm:$0xff]  ;;  %v147_v43 = vld [vmem:[%s478_s3] sm:$0xff] }
   0x6   :  { %351 = vmatprep.subr.mxu0 %v26_v3  ;;  %361 = vmatpush3.msra.mxu1 %v23_v5 }
   0x7   :  { %352 = vmatpush3.msra.mxu0 %v26_v3  ;;  %362 = vmatprep.subr.mxu1 %v22_v7 }
   0x8   :  { %353 = vmatprep.subr.mxu0 %v25_v6  ;;  %363 = vmatpush3.msra.mxu1 %v22_v7 }
   0x9   :  { %354 = vmatpush3.msra.mxu0 %v25_v6  ;;  %364 = vmatprep.subr.mxu1 %v21_v9 }
   0xa   :  { %356 = vmatmul.mubr.msk.f32.vlgmr.msra.gmra.mxu0 %vm29_vm0, %v20_v8  ;;  %365 = vmatpush3.msra.mxu1 %v21_v9 }
   0xb   :  { %366 = vmatprep.mubr.msk.f32.mxu1 %vm29_vm0, %v19_v2 }
   0xc   :  { %367 = vmatmul.mubr.msk.f32.vlgmr.msra.gmra.mxu1 %vm29_vm0, %v20_v8 }
  0xca   :  { %v357_v10 = vpop.f32.mrf.mxu0 }
  0xcb   :  { %v118_v11 = vand.u32 2147483647, %v357_v10  ;;  %v112_v32 = vmax.f32 %v357_v10, 0.0  ;;  %vm114_vm3 = vcmp.ne.f32.partialorder %v357_v10, %v357_v10 }
  0xcc   :  { %v102_v12 = vpop.f32.mrf.mxu0  ;;  %v368_v42 = vpop.f32.mrf.mxu1 }
  0xcd   :  { %v120_v13 = vsub.f32 0.0, %v118_v11  ;;  %v117_v14 = vand.u32 2147483647, %v102_v12  ;;  %v111_v37 = vmax.f32 %v102_v12, 0.0  ;;  %vm113_vm4 = vcmp.ne.f32.partialorder %v102_v12, %v102_v12 }
  0xce   :  { %v217_v47 = vpop.f32.mrf.mxu1 }
  0xcf   :  { %v123_v15 = vmul.f32 1.442695, %v120_v13  ;;  %v119_v16 = vsub.f32 0.0, %v117_v14 }
  0xd1   :  { %369 = vpow2.f32 %v123_v15  ;;  %v121_v17 = vmul.f32 1.442695, %v119_v16 }
  0xd3   :  { %371 = vpow2.f32 %v121_v17 }
  0xde   :  { %v370_v18 = vpop.eup %369 }
  0xdf   :  { %v134_v19 = vadd.f32 1.0, %v370_v18  ;;  %v137_v22 = vmul.f32 -0.5, %v370_v18  ;;  %v140_v25 = vand.u32 2147483647, %v370_v18 }
  0xe0   :  { %v372_v20 = vpop.eup %371 }
  0xe1   :  { %373 = vlog2.f32 %v134_v19  ;;  %v125_v21 = vadd.f32 1.0, %v372_v20  ;;  %v128_v23 = vmul.f32 -0.5, %v372_v20  ;;  %v138_v24 = vadd.f32 1.0, %v137_v22 }
  0xe2   :  { %v131_v28 = vand.u32 2147483647, %v372_v20  ;;  %vm141_vm1 = vcmp.lt.f32.partialorder %v140_v25, 0.0004427343 }
  0xe3   :  { %375 = vlog2.f32 %v125_v21  ;;  %v129_v26 = vadd.f32 1.0, %v128_v23  ;;  %v139_v30 = vmul.f32 %v370_v18, %v138_v24 }
  0xe4   :  { %vm132_vm2 = vcmp.lt.f32.partialorder %v131_v28, 0.0004427343 }
  0xe5   :  { %v130_v35 = vmul.f32 %v372_v20, %v129_v26 }
  0xee   :  { %v374_v27 = vpop.eup %373 }
  0xef   :  { %v136_v29 = vmul.f32 0.6931472, %v374_v27 }
  0xf0   :  { %v376_v31 = vpop.eup %375 }
  0xf1   :  { %v142_v33 = vsel %vm141_vm1, %v139_v30, %v136_v29  ;;  %v127_v34 = vmul.f32 0.6931472, %v376_v31 }
  0xf2   :  { %v144_v36 = vadd.f32 %v142_v33, %v112_v32 }
  0xf3   :  { %v133_v38 = vsel %vm132_vm2, %v130_v35, %v127_v34 }
  0xf4   :  { %v143_v39 = vadd.f32 %v133_v38, %v111_v37  ;;  %v146_v40 = vsel %vm114_vm3, %v357_v10, %v144_v36 }
  0xf5   :  { %v150_v45 = vmul.f32 %v148_v41, %v146_v40 }
  0xf6   :  { %v145_v44 = vsel %vm113_vm4, %v102_v12, %v143_v39 }
  0xf7   :  { %v149_v46 = vmul.f32 %v147_v43, %v145_v44  ;;  %v223_v49 = vadd.f32 %v368_v42, %v150_v45 }
  0xf9   :  { %v218_v48 = vadd.f32 %v217_v47, %v149_v46  ;;  %v232_v51 = vsel %vm228_vm5, %v223_v49, -inf }
  0xfb   :  { %v229_v50 = vsel %vm228_vm5, %v218_v48, -inf }
  0xfc   :  { %230 = vmax.xlane.f32.xlu0 %v229_v50 }
 0x100   :  { %233 = vmax.xlane.f32.xlu0 %v232_v51 }
 0x185   :  { %v231_v54 = vpop.xlane.xlu0 %230 }
 0x186   :  { %vm235_vm6 = vcmp.eq.f32.partialorder %v218_v48, %v231_v54 }
 0x187   :  { %v237_v55 = vsel %vm235_vm6, %v227_v53, 8 }
 0x188   :  { %v239_v56 = vsel %vm228_vm5, %v237_v55, 2147483647 }
 0x189   :  { %v234_v57 = vpop.xlane.xlu0 %233  ;;  %v241_v58 = vshra.s32 %v239_v56, 16  ;;  %v240_v0 = vand.u32 65535, %v239_v56 }
 0x18a   :  { %vm236_vm7 = vcmp.eq.f32.partialorder %v223_v49, %v234_v57 }
 0x18b   :  { %v238_v59 = vsel %vm236_vm7, %v227_v53, 8  ;;  %v243_v60 = vcvt.s32.f32 %v241_v58  ;;  %v242_v2 = vcvt.s32.f32 %v240_v0 }
 0x18c   :  { %v254_v61 = vsel %vm228_vm5, %v238_v59, 2147483647 }
 0x18d   :  { %244 = vmin.xlane.f32.xlu1 %v243_v60  ;;  %v256_v62 = vshra.s32 %v254_v61, 16  ;;  %v255_v3 = vand.u32 65535, %v254_v61 }
 0x18f   :  { %v258_v63 = vcvt.s32.f32 %v256_v62  ;;  %v257_v6 = vcvt.s32.f32 %v255_v3 }
 0x191   :  { %259 = vmin.xlane.f32.xlu1 %v258_v63 }
 0x216   :  { %v245_v1 = vpop.xlane.xlu1 %244 }
 0x217   :  { %vm246_vm8 = vcmp.eq.f32.partialorder %v243_v60, %v245_v1  ;;  %v251_v8 = vcvt.f32.s32 %v245_v1 }
 0x218   :  { %v247_v4 = vsel %vm246_vm8, %v242_v2, inf }
 0x219   :  { %248 = vmin.xlane.f32.xlu0 %v247_v4  ;;  %v252_v10 = vshll.u32 %v251_v8, 16 }
 0x21a   :  { %v260_v5 = vpop.xlane.xlu1 %259 }
 0x21b   :  { %vm261_vm9 = vcmp.eq.f32.partialorder %v258_v63, %v260_v5  ;;  %v266_v11 = vcvt.f32.s32 %v260_v5 }
 0x21c   :  { %v262_v7 = vsel %vm261_vm9, %v257_v6, inf }
 0x21d   :  { %263 = vmin.xlane.f32.xlu1 %v262_v7  ;;  %v267_v15 = vshll.u32 %v266_v11, 16 }
 0x2a2   :  { %v249_v9 = vpop.xlane.xlu0 %248 }
 0x2a3   :  { %v250_v12 = vcvt.f32.s32 %v249_v9 }
 0x2a5   :  { %v253_v13 = vadd.s32 %v252_v10, %v250_v12 }
 0x2a6   :  { %v264_v14 = vpop.xlane.xlu1 %263 }
 0x2a7   :  { %v265_v16 = vcvt.f32.s32 %v264_v14  ;;  %vm269_vm10 = vcmp.eq.s32.totalorder %v227_v53, %v253_v13 }
 0x2a8   :  { %v271_v17 = vsel %vm269_vm10, -inf, %v218_v48 }
 0x2a9   :  { %v268_v18 = vadd.s32 %v267_v15, %v265_v16  ;;  %v273_v19 = vsel %vm228_vm5, %v271_v17, -inf }
 0x2aa   :  { %274 = vmax.xlane.f32.xlu0 %v273_v19 }
 0x2ab   :  { %vm270_vm11 = vcmp.eq.s32.totalorder %v227_v53, %v268_v18 }
 0x2ac   :  { %v272_v20 = vsel %vm270_vm11, -inf, %v223_v49 }
 0x2ad   :  { %v276_v21 = vsel %vm228_vm5, %v272_v20, -inf }
 0x2ae   :  { %277 = vmax.xlane.f32.xlu1 %v276_v21 }
 0x333   :  { %v275_v22 = vpop.xlane.xlu0 %274 }
 0x334   :  { %vm279_vm14 = vcmp.eq.f32.partialorder %v271_v17, %v275_v22  ;;  %v314_v23 = vsel %vm313_vm12, %v231_v54, %v275_v22 }
 0x335   :  { %v281_v24 = vsel %vm279_vm14, %v227_v53, 8  ;;  %317 = vst.msk [vmem:[%s479_s4] sm:$0xff] %vm316_vm13, %v314_v23 }
 0x336   :  { %v283_v25 = vsel %vm228_vm5, %v281_v24, 2147483647 }
 0x337   :  { %v278_v26 = vpop.xlane.xlu1 %277  ;;  %v285_v27 = vshra.s32 %v283_v25, 16  ;;  %v284_v34 = vand.u32 65535, %v283_v25 }
 0x338   :  { %vm280_vm15 = vcmp.eq.f32.partialorder %v272_v20, %v278_v26  ;;  %v315_v28 = vsel %vm313_vm12, %v234_v57, %v278_v26 }
 0x339   :  { %v282_v29 = vsel %vm280_vm15, %v227_v53, 8  ;;  %318 = vst.msk [vmem:[%s479_s4 + $0x8] sm:$0xff] %vm316_vm13, %v315_v28  ;;  %v287_v30 = vcvt.s32.f32 %v285_v27  ;;  %v286_v36 = vcvt.s32.f32 %v284_v34 }
 0x33a   :  { %v298_v31 = vsel %vm228_vm5, %v282_v29, 2147483647 }
 0x33b   :  { %288 = vmin.xlane.f32.xlu0 %v287_v30  ;;  %v300_v32 = vshra.s32 %v298_v31, 16  ;;  %v299_v37 = vand.u32 65535, %v298_v31 }
 0x33d   :  { %v302_v33 = vcvt.s32.f32 %v300_v32  ;;  %v301_v40 = vcvt.s32.f32 %v299_v37 }
 0x33f   :  { %303 = vmin.xlane.f32.xlu1 %v302_v33 }
 0x3c4   :  { %v289_v35 = vpop.xlane.xlu0 %288 }
 0x3c5   :  { %vm290_vm0 = vcmp.eq.f32.partialorder %v287_v30, %v289_v35  ;;  %v295_v42 = vcvt.f32.s32 %v289_v35 }
 0x3c6   :  { %v291_v38 = vsel %vm290_vm0, %v286_v36, inf }
 0x3c7   :  { %292 = vmin.xlane.f32.xlu0 %v291_v38  ;;  %v296_v44 = vshll.u32 %v295_v42, 16 }
 0x3c8   :  { %v304_v39 = vpop.xlane.xlu1 %303 }
 0x3c9   :  { %vm305_vm1 = vcmp.eq.f32.partialorder %v302_v33, %v304_v39  ;;  %v310_v45 = vcvt.f32.s32 %v304_v39 }
 0x3ca   :  { %v306_v41 = vsel %vm305_vm1, %v301_v40, inf }
 0x3cb   :  { %307 = vmin.xlane.f32.xlu1 %v306_v41  ;;  %v311_v49 = vshll.u32 %v310_v45, 16 }
 0x450   :  { %v293_v43 = vpop.xlane.xlu0 %292 }
 0x451   :  { %v294_v46 = vcvt.f32.s32 %v293_v43 }
 0x453   :  { %v297_v47 = vadd.s32 %v296_v44, %v294_v46 }
 0x454   :  { %v308_v48 = vpop.xlane.xlu1 %307 }
 0x455   :  { %v319_v50 = vsel %vm313_vm12, %v253_v13, %v297_v47  ;;  %v309_v51 = vcvt.f32.s32 %v308_v48 }
 0x456   :  { %321 = vst.msk [vmem:[%s480_s5] sm:$0xff] %vm316_vm13, %v319_v50 }
 0x457   :  { %v312_v52 = vadd.s32 %v311_v49, %v309_v51 }
 0x459   :  { %v320_v53 = vsel %vm313_vm12, %v268_v18, %v312_v52 }
 0x45a   :  { %322 = vst.msk [vmem:[%s480_s5 + $0x8] sm:$0xff] %vm316_vm13, %v320_v53 }

</bundles_post_ra>
